<compile_context>
chip_gen: v5e
topology: v5e:2x2
jax: 0.10.0
libtpu: 0.0.40
codegen_flags: <defaults>
</compile_context>

<pallas_src>
import functools

import jax
import jax.numpy as jnp
from jax.experimental import pallas as pl
from jax.experimental.pallas import tpu as pltpu


def _ce_label_smooth_kernel(
    logits_ref,      # (TB, C)       float   VMEM
    targets_ref,     # (TB, 1)       int32   VMEM
    out_ref,         # (1, 8, 128)   float32 VMEM  (per-core resident partial sum)
    *,
    epsilon,
    num_classes,
    true_batch,
    steps_per_core,
    needs_mask,
):
    s = pl.program_id(1)

    @pl.when(s == 0)
    def _():
        out_ref[...] = jnp.zeros_like(out_ref)

    x = logits_ref[...].astype(jnp.float32)                           # (TB, C)
    tb, c = x.shape

    # Numerically-stable log-softmax pieces.
    m = jnp.max(x, axis=1, keepdims=True)                             # (TB, 1)
    shifted = x - m                                                   # (TB, C)
    lse = jnp.log(jnp.sum(jnp.exp(shifted), axis=1, keepdims=True))   # (TB, 1)

    # Single fused weighted reduce over classes:
    #   loss_row = lse - sum_c w_c * shifted_c,   w_c = eps/C + (1-eps)*[c == target]
    off_w = epsilon / num_classes
    on_w = 1.0 - epsilon + off_w
    cls_idx = jax.lax.broadcasted_iota(jnp.int32, (tb, c), 1)         # (TB, C)
    w = jnp.where(cls_idx == targets_ref[...], on_w, off_w)           # (TB, C)
    combined = jnp.sum(shifted * w, axis=1, keepdims=True)            # (TB, 1)
    loss_row = lse - combined                                         # (TB, 1)

    if needs_mask:
        # Rows past the true batch (trailing partial tile, or clamped tiles when the
        # tile count does not split evenly across cores) contribute zero.
        i_block = pl.program_id(0) * steps_per_core + s
        row_idx = i_block * tb + jax.lax.broadcasted_iota(jnp.int32, (tb, 1), 0)
        loss_row = jnp.where(row_idx < true_batch, loss_row, 0.0)

    # Broadcast-accumulate the tile's scalar sum into the (8,128) resident block:
    # one vreg add; every element ends up holding this core's partial sum.
    out_ref[...] += jnp.sum(loss_row)


def _vmem_capacity_bytes():
    try:
        return int(pltpu.get_tpu_info().vmem_capacity_bytes)
    except Exception:
        return 64 * 1024 * 1024   # conservative default (v7x per-core VMEM)


def _choose_block_b(batch, num_classes, dtype, vmem_cap):
    """Batch tile: multiple of the sublane count; f32 working tile ~vmem/8 (4..16 MiB)."""
    sublane = 16 if dtype == jnp.bfloat16 else 8
    target_f32_bytes = min(16 << 20, max(4 << 20, vmem_cap // 8))
    tb = (target_f32_bytes // max(1, num_classes * 4)) // sublane * sublane
    tb = max(sublane, tb)
    if tb >= batch:
        return batch   # single block spanning the full (small) batch
    return tb


def cross_entropy_loss(logits, targets, *, num_classes, epsilon=0.1,
                       label_smooth=True, block_b=None, num_cores=None):
    """logits: (B, C) float (f32 or bf16), targets: (B,) int -> scalar f32 loss."""
    eps = float(epsilon) if label_smooth else 0.0
    B, C = logits.shape
    assert C == num_classes
    targets2d = targets.astype(jnp.int32).reshape(B, 1)

    itemsize = jnp.dtype(logits.dtype).itemsize
    vmem_cap = _vmem_capacity_bytes()
    tb = block_b if block_b is not None else _choose_block_b(B, C, logits.dtype, vmem_cap)

    total_blocks = (B + tb - 1) // tb
    if num_cores is None:
        num_cores = 2 if total_blocks >= 2 else 1
    num_cores = max(1, min(num_cores, total_blocks))
    steps_per_core = (total_blocks + num_cores - 1) // num_cores

    needs_mask = (B % tb != 0) or (num_cores * steps_per_core != total_blocks)

    # VMEM budget: double-buffered input blocks + ~3x f32 tile for temporaries + slack,
    # clamped to 3/4 of physical VMEM (≈48 MiB on v7x, ≈96 MiB on v5e/v6e).
    block_bytes = tb * C * itemsize
    f32_tile_bytes = tb * C * 4
    vmem_budget = 2 * block_bytes + 3 * f32_tile_bytes + (2 << 20)
    vmem_ceiling = (vmem_cap * 3) // 4
    vmem_limit = min(vmem_ceiling, max(32 << 20, vmem_budget))

    last_block = total_blocks - 1

    def _block_index(c, s):
        # Clamp so uneven core splits never index past the array; those tiles are
        # fully masked inside the kernel (needs_mask is True in that case).
        return jnp.minimum(c * steps_per_core + s, last_block)

    kernel = functools.partial(
        _ce_label_smooth_kernel,
        epsilon=eps,
        num_classes=num_classes,
        true_batch=B,
        steps_per_core=steps_per_core,
        needs_mask=needs_mask,
    )

    partials = pl.pallas_call(
        kernel,
        out_shape=jax.ShapeDtypeStruct((num_cores, 8, 128), jnp.float32),
        grid_spec=pltpu.PrefetchScalarGridSpec(
            num_scalar_prefetch=0,
            grid=(num_cores, steps_per_core),
            in_specs=[
                pl.BlockSpec((tb, C), lambda c, s: (_block_index(c, s), 0)),   # logits
                pl.BlockSpec((tb, 1), lambda c, s: (_block_index(c, s), 0)),   # targets
            ],
            out_specs=pl.BlockSpec((1, 8, 128), lambda c, s: (c, 0, 0)),       # per-core
        ),
        compiler_params=pltpu.CompilerParams(
            dimension_semantics=("parallel", "arbitrary"),
            vmem_limit_bytes=int(vmem_limit),
        ),
    )(logits, targets2d)

    # Tiny final reduction + mean in plain JAX.
    return jnp.sum(partials[:, 0, 0]) / B


def _reference(logits, targets, num_classes, epsilon):
    log_probs = jax.nn.log_softmax(logits.astype(jnp.float32), axis=1)
    onehot = jax.nn.one_hot(targets, num_classes, dtype=jnp.float32)
    t = (1.0 - epsilon) * onehot + epsilon / num_classes
    return jnp.sum(jnp.mean(-t * log_probs, axis=0))


if __name__ == "__main__":
    key = jax.random.PRNGKey(0)

    # --- small test matching the module's forward: (batch, num_classes) logits ---
    k1, k2 = jax.random.split(key)
    batch, num_classes = 4, 8
    logits = jax.random.normal(k1, (batch, num_classes), dtype=jnp.float32)
    targets = jax.random.randint(k2, (batch,), 0, num_classes, dtype=jnp.int32)

    loss = cross_entropy_loss(
        logits, targets, num_classes=num_classes, epsilon=0.1, label_smooth=True
    )
    loss = jax.block_until_ready(loss)
    ref = _reference(logits, targets, num_classes, 0.1)
    assert jnp.allclose(loss, ref, atol=1e-5, rtol=1e-5), (loss, ref)

    # --- gridded path: 2 "cores" x 2 steps, trailing partial tile masked ---
    k3, k4 = jax.random.split(k2)
    b2, c2 = 50, 256
    logits2 = jax.random.normal(k3, (b2, c2), dtype=jnp.float32)
    targets2 = jax.random.randint(k4, (b2,), 0, c2, dtype=jnp.int32)
    loss2 = cross_entropy_loss(
        logits2, targets2, num_classes=c2, epsilon=0.1, label_smooth=True, block_b=16
    )
    loss2 = jax.block_until_ready(loss2)
    ref2 = _reference(logits2, targets2, c2, 0.1)
    assert jnp.allclose(loss2, ref2, atol=1e-5, rtol=1e-5), (loss2, ref2)

    # --- bf16 logits streamed as bf16; uneven core split (3 tiles over 2 cores) ---
    k5, k6 = jax.random.split(k4)
    b3, c3 = 48, 128
    logits3 = jax.random.normal(k5, (b3, c3), dtype=jnp.float32).astype(jnp.bfloat16)
    targets3 = jax.random.randint(k6, (b3,), 0, c3, dtype=jnp.int32)
    loss3 = cross_entropy_loss(
        logits3, targets3, num_classes=c3, epsilon=0.1, label_smooth=True, block_b=16
    )
    loss3 = jax.block_until_ready(loss3)
    ref3 = _reference(logits3, targets3, c3, 0.1)
    assert jnp.allclose(loss3, ref3, atol=1e-4, rtol=1e-4), (loss3, ref3)

    # --- label_smooth=False (epsilon forced to 0) ---
    loss4 = cross_entropy_loss(
        logits, targets, num_classes=num_classes, epsilon=0.1, label_smooth=False
    )
    loss4 = jax.block_until_ready(loss4)
    ref4 = _reference(logits, targets, num_classes, 0.0)
    assert jnp.allclose(loss4, ref4, atol=1e-5, rtol=1e-5), (loss4, ref4)

    print("KERNEL_OK")
</pallas_src>

<mosaic_0001>
module attributes {stable_mosaic.version = 11 : i64} {
  func.func @_ce_label_smooth_kernel(%arg0: i32, %arg1: i32, %arg2: memref<4x8xf32, #tpu.memory_space<vmem>>, %arg3: memref<4x1xi32, #tpu.memory_space<vmem>>, %arg4: memref<1x8x128xf32, #tpu.memory_space<vmem>>) attributes {dimension_semantics = [#tpu.dimension_semantics<parallel>, #tpu.dimension_semantics<arbitrary>], iteration_bounds = array<i64: 1, 1>, scalar_prefetch = 0 : i64, scratch_operands = 0 : i64, tpu.core_type = #tpu.core_type<tc>, window_params = [{transform_indices = @transform_0, window_bounds = array<i64: 4, 8>}, {transform_indices = @transform_1, window_bounds = array<i64: 4, 1>}, {transform_indices = @transform_2, window_bounds = array<i64: 1, 8, 128>}]} {
    %c0_i32 = arith.constant 0 : i32
    %0 = arith.cmpi eq, %arg1, %c0_i32 : i32
    %1 = arith.extui %0 : i1 to i32
    %c0_i32_0 = arith.constant 0 : i32
    %2 = arith.cmpi ne, %1, %c0_i32_0 : i32
    scf.if %2 {
      %cst_15 = arith.constant 0.000000e+00 : f32
      %31 = vector.broadcast %cst_15 : f32 to vector<1x8x128xf32>
      %c0_16 = arith.constant 0 : index
      %c0_17 = arith.constant 0 : index
      %c0_18 = arith.constant 0 : index
      %32 = vector.load %arg4[%c0_16, %c0_17, %c0_18] : memref<1x8x128xf32, #tpu.memory_space<vmem>>, vector<1x8x128xf32>
      tpu.vector_store %arg4[%c0_16, %c0_17, %c0_18], %31 {strides = array<i32>} : memref<1x8x128xf32, #tpu.memory_space<vmem>>, vector<1x8x128xf32>,
    } else {
    }
    %c0 = arith.constant 0 : index
    %c0_1 = arith.constant 0 : index
    %3 = vector.load %arg2[%c0, %c0_1] : memref<4x8xf32, #tpu.memory_space<vmem>>, vector<4x8xf32>
    %cst = arith.constant dense<0xFF800000> : vector<4xf32>
    %4 = vector.multi_reduction <maximumf>, %3, %cst [1] : vector<4x8xf32> to vector<4xf32>
    %5 = vector.shape_cast %4 : vector<4xf32> to vector<4x1xf32>
    %6 = vector.broadcast %5 : vector<4x1xf32> to vector<4x8xf32>
    %7 = arith.subf %3, %6 : vector<4x8xf32>
    %8 = math.exp %7 : vector<4x8xf32>
    %cst_2 = arith.constant dense<0.000000e+00> : vector<4xf32>
    %9 = vector.multi_reduction <add>, %8, %cst_2 [1] : vector<4x8xf32> to vector<4xf32>
    %10 = vector.shape_cast %9 : vector<4xf32> to vector<4x1xf32>
    %11 = math.log %10 : vector<4x1xf32>
    %12 = tpu.iota {dimensions = array<i32: 1>} : vector<4x8xi32>
    %c0_3 = arith.constant 0 : index
    %c0_4 = arith.constant 0 : index
    %13 = vector.load %arg3[%c0_3, %c0_4] : memref<4x1xi32, #tpu.memory_space<vmem>>, vector<4x1xi32>
    %14 = vector.broadcast %13 : vector<4x1xi32> to vector<4x8xi32>
    %15 = arith.cmpi eq, %12, %14 : vector<4x8xi32>
    %cst_5 = arith.constant 9.125000e-01 : f32
    %cst_6 = arith.constant 1.250000e-02 : f32
    %16 = vector.broadcast %cst_5 : f32 to vector<4x8xf32>
    %17 = vector.broadcast %cst_6 : f32 to vector<4x8xf32>
    %18 = arith.select %15, %16, %17 : vector<4x8xi1>, vector<4x8xf32>
    %19 = arith.mulf %7, %18 : vector<4x8xf32>
    %cst_7 = arith.constant dense<0.000000e+00> : vector<4xf32>
    %20 = vector.multi_reduction <add>, %19, %cst_7 [1] : vector<4x8xf32> to vector<4xf32>
    %21 = vector.shape_cast %20 : vector<4xf32> to vector<4x1xf32>
    %22 = arith.subf %11, %21 : vector<4x1xf32>
    %c0_8 = arith.constant 0 : index
    %c0_9 = arith.constant 0 : index
    %c0_10 = arith.constant 0 : index
    %23 = vector.load %arg4[%c0_8, %c0_9, %c0_10] : memref<1x8x128xf32, #tpu.memory_space<vmem>>, vector<1x8x128xf32>
    %24 = vector.shape_cast %22 : vector<4x1xf32> to vector<1x4x1xf32>
    %cst_11 = arith.constant dense<0.000000e+00> : vector<1xf32>
    %25 = vector.multi_reduction <add>, %24, %cst_11 [1, 2] : vector<1x4x1xf32> to vector<1xf32>
    %26 = vector.shape_cast %25 : vector<1xf32> to vector<1x1x1xf32>
    %27 = vector.extract %26[0, 0, 0] : f32 from vector<1x1x1xf32>
    %28 = vector.broadcast %27 : f32 to vector<1x8x128xf32>
    %29 = arith.addf %23, %28 : vector<1x8x128xf32>
    %c0_12 = arith.constant 0 : index
    %c0_13 = arith.constant 0 : index
    %c0_14 = arith.constant 0 : index
    %30 = vector.load %arg4[%c0_12, %c0_13, %c0_14] : memref<1x8x128xf32, #tpu.memory_space<vmem>>, vector<1x8x128xf32>
    tpu.vector_store %arg4[%c0_12, %c0_13, %c0_14], %29 {strides = array<i32>} : memref<1x8x128xf32, #tpu.memory_space<vmem>>, vector<1x8x128xf32>,
    return
  }
  func.func @transform_0(%arg0: i32, %arg1: i32) -> (i32, i32) {
    %c1_i32 = arith.constant 1 : i32
    %0 = arith.muli %arg0, %c1_i32 : i32
    %1 = arith.addi %0, %arg1 : i32
    %c0_i32 = arith.constant 0 : i32
    %2 = arith.minsi %1, %c0_i32 : i32
    %c0_i32_0 = arith.constant 0 : i32
    %c0_i32_1 = arith.constant 0 : i32
    return %2, %c0_i32_0 : i32, i32
  }
  func.func @transform_1(%arg0: i32, %arg1: i32) -> (i32, i32) {
    %c1_i32 = arith.constant 1 : i32
    %0 = arith.muli %arg0, %c1_i32 : i32
    %1 = arith.addi %0, %arg1 : i32
    %c0_i32 = arith.constant 0 : i32
    %2 = arith.minsi %1, %c0_i32 : i32
    %c0_i32_0 = arith.constant 0 : i32
    %c0_i32_1 = arith.constant 0 : i32
    return %2, %c0_i32_0 : i32, i32
  }
  func.func @transform_2(%arg0: i32, %arg1: i32) -> (i32, i32, i32) {
    %c0_i32 = arith.constant 0 : i32
    %c0_i32_0 = arith.constant 0 : i32
    %c0_i32_1 = arith.constant 0 : i32
    return %arg0, %c0_i32, %c0_i32_0 : i32, i32, i32
  }
}

</mosaic_0001>

<bundles_post_ra>
// kernel: tpu_custom_call.1
= control target key start
LH: loop header
LB: loop body
LE: loop exit
PB: predicated region body
PF: predicated region fallthrough
CT: control target
= control target key end

     0   :  { %vm72_vm0 = vcmask 60416   ;;  %v177_v2 = vmov 0   ;;  %s207_s0 = inlined_call_operand.vmem [shape: f32[4,8], index: 0, kind: input, shape index: {}]   ;;  %s208_s1 = inlined_call_operand.vmem [shape: s32[4,1], index: 1, kind: input, shape index: {}]   ;;  %s209_s2 = inlined_call_operand.hbm [shape: f32[1,8,128], index: 2, kind: output, shape index: {}]  }
   0x1   :  { %v71_v0 = vld [vmem:[%s207_s0] sm:$0xf]  ;;  %146 = vset.pattern.permute.xlu0 %v177_v2 }
   0x2   :  { %v73_v1 = vsel %vm72_vm0, %v71_v0, -inf }
   0x3   :  { %7 = vsyncpa [#allocation3], 0  ;;  %74 = vmax.xlane.f32.xlu0 %v73_v1  ;;  %v86_v3 = vld [vmem:[%s208_s1] sm:$0xf]  ;;  %v84_v9 = vlaneseq  ;;  %v178_v12 = vmov 0.0125  }
   0x4   :  { %vm98_vm2 = vcmask 3072   ;;  %s179_s0 = smov [#allocation2]   ;;  %s119_s15 = sshll.u32 %s209_s2, 4  ;;  %s120_s15 = int_to_ptr.hbm [resolvable:$true] %s119_s15 }
   0x5   :  { %v85_v10 = vand.u32 127, %v84_v9  ;;  %s117_s1 = sshll.u32 %s179_s0, 4  ;;  %s118_s1 = int_to_ptr.vmem [resolvable:$true] %s117_s1 }
  0x17   :  { %88 = vperm.xlu0 %146, %v86_v3  }
  0x76   :  { %v75_v4 = vpop.xlane.xlu0 %74 }
  0x77   :  { %v76_v5 = vsub.f32 %v71_v0, %v75_v4 }
  0x79   :  { %v77_v6 = vmul.f32 1.442695, %v76_v5 }
  0x7b   :  { %147 = vpow2.f32 %v77_v6 }
  0x81   :  { %v148_v7 = vpop.eup %147 }
  0x82   :  { %v79_v8 = vsel %vm72_vm0, %v148_v7, 0.0 }
  0x83   :  { %80 = vadd.xlane.f32.xlu1 %v79_v8 }
  0x89   :  { %v89_v11 = vpop.permute.xlu0 %88 }
  0x8a   :  { %vm90_vm1 = vcmp.eq.s32.totalorder %v85_v10, %v89_v11 }
  0x8b   :  { %v91_v13 = vsel %vm90_vm1, 0.9125, %v178_v12 }
  0x8c   :  { %v92_v14 = vmul.f32 %v91_v13, %v76_v5 }
  0x8e   :  { %v93_v15 = vsel %vm72_vm0, %v92_v14, 0.0 }
  0x8f   :  { %94 = vadd.xlane.f32.xlu1 %v93_v15 }
  0xf6   :  { %v81_v16 = vpop.xlane.xlu1 %80 }
  0xf7   :  { %149 = vlog2.f32 %v81_v16 }
  0xfd   :  { %v150_v17 = vpop.eup %149 }
  0xfe   :  { %v83_v18 = vmul.f32 0.6931472, %v150_v17 }
 0x102   :  { %v95_v19 = vpop.xlane.xlu1 %94 }
 0x103   :  { %v96_v20 = vsub.f32 %v83_v18, %v95_v19 }
 0x105   :  { %v99_v21 = vsel %vm98_vm2, %v96_v20, 0.0 }
 0x106   :  { %100 = vadd.xlane.f32.xlu2 %v99_v21 }
 0x179   :  { %v101_v22 = vpop.xlane.xlu2 %100 }
 0x17a   :  { %v102_v23 = vrot.slane %v101_v22, 4 }
 0x17c   :  { %v103_v24 = vadd.f32 %v102_v23, %v101_v22 }
 0x17e   :  { %v104_v25 = vrot.slane %v103_v24, 2 }
 0x180   :  { %v105_v26 = vadd.f32 %v104_v25, %v103_v24 }
 0x182   :  { %v106_v27 = vrot.slane %v105_v26, 1 }
 0x184   :  { %v107_v28 = vadd.f32 %v106_v27, %v105_v26 }
 0x186   :  { %140 = vpush %v107_v28 }
 0x1b7   :  { %s141_s16 = spop %140 }
 0x1b8   :  { %v109_v29 = vstv %s141_s16 }
 0x1b9   :  { %111 = vst [vmem:[#allocation2] sm:$0xff] %v109_v29 }
 0x1ba   :  { %122 = dma.vmem_to_hbm [thread:$0]  %s118_s1, 128, %s120_s15, [#allocation3]  }
 0x1bb   :  { %175 = dma.done.wait [#allocation3], 128  }
 0x1bc   :  { %176 = vsyncadd [#allocation3], 4294967168 }
 0x1bd   :  { %127 = vsyncpa [#allocation3], 1 }

</bundles_post_ra>
